<compile_context>
chip_gen: v7x
topology: tpu7x:2x2x1
jax: 0.10.0
libtpu: 0.0.40
codegen_flags: <defaults>
</compile_context>

<pallas_src>
import functools

import jax
import jax.numpy as jnp
from jax.experimental import pallas as pl
from jax.experimental.pallas import tpu as pltpu


def _round_up(n, m):
    return ((n + m - 1) // m) * m


def _pad_to(a, shape):
    pads = [(0, t - s) for s, t in zip(a.shape, shape)]
    return jnp.pad(a, pads)


def _fwd_kernel(x_ref, rand_ref, w1_ref, b1_ref, w2_ref, b2_ref, o_ref,
                *, p: float, training: bool):
    # fc1: (TILE_B, 128) @ (128, 128) + (1, 128)   -- f32 MXU accumulate
    h = jnp.dot(x_ref[...], w1_ref[...], preferred_element_type=jnp.float32)
    h = h + b1_ref[...]

    if training:
        # Fused ReLU + inverted dropout: keep iff (uniform >= p) AND (h > 0),
        # scale kept activations by 1/(1-p). Single jnp.where pass on the vreg.
        scale = 1.0 / (1.0 - p)
        keep = (rand_ref[...] >= p) & (h > 0.0)
        h = jnp.where(keep, h * scale, 0.0)
    else:
        h = jnp.maximum(h, 0.0)

    # fc2: (TILE_B, 128) @ (128, 128) + (1, 128)
    out = jnp.dot(h, w2_ref[...], preferred_element_type=jnp.float32)
    out = out + b2_ref[...]
    o_ref[...] = out.astype(o_ref.dtype)


def mlp_forward(x, w1, b1, w2, b2, key=None, *, training=True, p=0.5,
                tile_b=256):
    """Forward pass. x: (B, 100), w1: (100, 50), b1: (50,)/(1,50),
    w2: (50, 10), b2: (10,)/(1,10). Returns (B, 10) float32."""
    B, in_f = x.shape
    hid = w1.shape[1]
    out_f = w2.shape[1]

    IN_PAD = _round_up(in_f, 128)
    HID_PAD = _round_up(hid, 128)
    OUT_PAD = _round_up(out_f, 128)

    # Batch tile: multiple of 8 sublanes; don't over-pad tiny batches.
    tile_b = min(tile_b, _round_up(B, 8))
    B_PAD = _round_up(B, tile_b)
    grid = (B_PAD // tile_b,)

    # Zero-pad once in the wrapper (padded features contribute exactly zero).
    x_p = _pad_to(x.astype(jnp.float32), (B_PAD, IN_PAD))
    w1_p = _pad_to(w1.astype(jnp.float32), (IN_PAD, HID_PAD))
    b1_p = _pad_to(jnp.reshape(b1, (1, -1)).astype(jnp.float32), (1, HID_PAD))
    w2_p = _pad_to(w2.astype(jnp.float32), (HID_PAD, OUT_PAD))
    b2_p = _pad_to(jnp.reshape(b2, (1, -1)).astype(jnp.float32), (1, OUT_PAD))

    if training:
        if key is None:
            raise ValueError("training=True requires a PRNG key for dropout")
        rand = jax.random.uniform(key, (B_PAD, HID_PAD), jnp.float32)
        rand_spec = pl.BlockSpec((tile_b, HID_PAD), lambda i: (i, 0))
    else:
        rand = jnp.zeros((tile_b, HID_PAD), jnp.float32)   # unused in kernel
        rand_spec = pl.BlockSpec((tile_b, HID_PAD), lambda i: (0, 0))

    kernel = functools.partial(_fwd_kernel, p=p, training=training)

    out = pl.pallas_call(
        kernel,
        out_shape=jax.ShapeDtypeStruct((B_PAD, OUT_PAD), jnp.float32),
        grid=grid,
        in_specs=[
            pl.BlockSpec((tile_b, IN_PAD), lambda i: (i, 0)),   # x (streamed)
            rand_spec,                                          # dropout rand
            pl.BlockSpec((IN_PAD, HID_PAD), lambda i: (0, 0)),  # w1 (resident)
            pl.BlockSpec((1, HID_PAD), lambda i: (0, 0)),       # b1 (resident)
            pl.BlockSpec((HID_PAD, OUT_PAD), lambda i: (0, 0)), # w2 (resident)
            pl.BlockSpec((1, OUT_PAD), lambda i: (0, 0)),       # b2 (resident)
        ],
        out_specs=pl.BlockSpec((tile_b, OUT_PAD), lambda i: (i, 0)),
        compiler_params=pltpu.CompilerParams(
            dimension_semantics=("parallel",)),
    )(x_p, rand, w1_p, b1_p, w2_p, b2_p)

    # Lane-dense padded store inside the kernel; cheap slice back in the wrapper.
    return out[:B, :out_f]


def _init_linear(key, fan_in, fan_out):
    # Mimics nn.Linear's uniform(-1/sqrt(fan_in), 1/sqrt(fan_in)) init.
    kw, kb = jax.random.split(key)
    bound = 1.0 / jnp.sqrt(fan_in)
    w = jax.random.uniform(kw, (fan_in, fan_out), jnp.float32, -bound, bound)
    b = jax.random.uniform(kb, (1, fan_out), jnp.float32, -bound, bound)
    return w, b


if __name__ == "__main__":
    key = jax.random.PRNGKey(0)
    kx, k1, k2, kdrop = jax.random.split(key, 4)

    B = 8
    x = jax.random.normal(kx, (B, 100), jnp.float32)
    w1, b1 = _init_linear(k1, 100, 50)
    w2, b2 = _init_linear(k2, 50, 10)

    # Training-mode forward (with dropout) -- matches PyTorch default train() mode.
    out_train = mlp_forward(x, w1, b1, w2, b2, kdrop, training=True, p=0.5)
    out_train = jax.block_until_ready(out_train)
    assert out_train.shape == (B, 10)
    assert bool(jnp.all(jnp.isfinite(out_train)))

    # Eval-mode forward (dropout = identity) -- verify against pure-JAX reference.
    out_eval = mlp_forward(x, w1, b1, w2, b2, training=False)
    out_eval = jax.block_until_ready(out_eval)
    ref = jnp.maximum(x @ w1 + b1, 0.0) @ w2 + b2
    assert bool(jnp.allclose(out_eval, ref, atol=1e-4, rtol=1e-4))

    # TODO(synk): dropout mask cannot bit-match torch's RNG; statistical
    # equivalence only (same keep-prob 1-p and 1/(1-p) scaling).
    print("KERNEL_OK")
</pallas_src>

<mosaic_0001>
module attributes {stable_mosaic.version = 11 : i64} {
  func.func @_fwd_kernel(%arg0: i32, %arg1: memref<8x128xf32, #tpu.memory_space<vmem>>, %arg2: memref<8x128xf32, #tpu.memory_space<vmem>>, %arg3: memref<128x128xf32, #tpu.memory_space<vmem>>, %arg4: memref<1x128xf32, #tpu.memory_space<vmem>>, %arg5: memref<128x128xf32, #tpu.memory_space<vmem>>, %arg6: memref<1x128xf32, #tpu.memory_space<vmem>>, %arg7: memref<8x128xf32, #tpu.memory_space<vmem>>) attributes {dimension_semantics = [#tpu.dimension_semantics<parallel>], iteration_bounds = array<i64: 1>, scalar_prefetch = 0 : i64, scratch_operands = 0 : i64, tpu.core_type = #tpu.core_type<tc>, window_params = [{transform_indices = @transform_0, window_bounds = array<i64: 8, 128>}, {transform_indices = @transform_1, window_bounds = array<i64: 8, 128>}, {pipeline_mode = #tpu.pipeline_mode<synchronous>, transform_indices = @transform_2, window_bounds = array<i64: 128, 128>}, {pipeline_mode = #tpu.pipeline_mode<synchronous>, transform_indices = @transform_3, window_bounds = array<i64: 1, 128>}, {pipeline_mode = #tpu.pipeline_mode<synchronous>, transform_indices = @transform_4, window_bounds = array<i64: 128, 128>}, {pipeline_mode = #tpu.pipeline_mode<synchronous>, transform_indices = @transform_5, window_bounds = array<i64: 1, 128>}, {transform_indices = @transform_6, window_bounds = array<i64: 8, 128>}]} {
    %c0 = arith.constant 0 : index
    %c0_0 = arith.constant 0 : index
    %0 = vector.load %arg1[%c0, %c0_0] : memref<8x128xf32, #tpu.memory_space<vmem>>, vector<8x128xf32>
    %c0_1 = arith.constant 0 : index
    %c0_2 = arith.constant 0 : index
    %1 = vector.load %arg3[%c0_1, %c0_2] : memref<128x128xf32, #tpu.memory_space<vmem>>, vector<128x128xf32>
    %cst = arith.constant dense<0.000000e+00> : vector<8x128xf32>
    %2 = tpu.matmul %0, %1, %cst {dimension_numbers = #tpu.dot_dimension_numbers<[1], [0], [0], [1], [0, 0, 1, 1], [], []>} : vector<8x128xf32>, vector<128x128xf32>, vector<8x128xf32> -> vector<8x128xf32>
    %c0_3 = arith.constant 0 : index
    %c0_4 = arith.constant 0 : index
    %3 = vector.load %arg4[%c0_3, %c0_4] : memref<1x128xf32, #tpu.memory_space<vmem>>, vector<1x128xf32>
    %4 = vector.broadcast %3 : vector<1x128xf32> to vector<8x128xf32>
    %5 = arith.addf %2, %4 : vector<8x128xf32>
    %c0_5 = arith.constant 0 : index
    %c0_6 = arith.constant 0 : index
    %6 = vector.load %arg2[%c0_5, %c0_6] : memref<8x128xf32, #tpu.memory_space<vmem>>, vector<8x128xf32>
    %cst_7 = arith.constant 5.000000e-01 : f32
    %7 = vector.broadcast %cst_7 : f32 to vector<8x128xf32>
    %8 = arith.cmpf oge, %6, %7 : vector<8x128xf32>
    %cst_8 = arith.constant 0.000000e+00 : f32
    %9 = vector.broadcast %cst_8 : f32 to vector<8x128xf32>
    %10 = arith.cmpf ogt, %5, %9 : vector<8x128xf32>
    %11 = arith.andi %8, %10 : vector<8x128xi1>
    %cst_9 = arith.constant 2.000000e+00 : f32
    %12 = vector.broadcast %cst_9 : f32 to vector<8x128xf32>
    %13 = arith.mulf %5, %12 : vector<8x128xf32>
    %cst_10 = arith.constant 0.000000e+00 : f32
    %14 = vector.broadcast %cst_10 : f32 to vector<8x128xf32>
    %15 = arith.select %11, %13, %14 : vector<8x128xi1>, vector<8x128xf32>
    %c0_11 = arith.constant 0 : index
    %c0_12 = arith.constant 0 : index
    %16 = vector.load %arg5[%c0_11, %c0_12] : memref<128x128xf32, #tpu.memory_space<vmem>>, vector<128x128xf32>
    %cst_13 = arith.constant dense<0.000000e+00> : vector<8x128xf32>
    %17 = tpu.matmul %15, %16, %cst_13 {dimension_numbers = #tpu.dot_dimension_numbers<[1], [0], [0], [1], [0, 0, 1, 1], [], []>} : vector<8x128xf32>, vector<128x128xf32>, vector<8x128xf32> -> vector<8x128xf32>
    %c0_14 = arith.constant 0 : index
    %c0_15 = arith.constant 0 : index
    %18 = vector.load %arg6[%c0_14, %c0_15] : memref<1x128xf32, #tpu.memory_space<vmem>>, vector<1x128xf32>
    %19 = vector.broadcast %18 : vector<1x128xf32> to vector<8x128xf32>
    %20 = arith.addf %17, %19 : vector<8x128xf32>
    %c0_16 = arith.constant 0 : index
    %c0_17 = arith.constant 0 : index
    %21 = vector.load %arg7[%c0_16, %c0_17] : memref<8x128xf32, #tpu.memory_space<vmem>>, vector<8x128xf32>
    tpu.vector_store %arg7[%c0_16, %c0_17], %20 {strides = array<i32>} : memref<8x128xf32, #tpu.memory_space<vmem>>, vector<8x128xf32>,
    return
  }
  func.func @transform_0(%arg0: i32) -> (i32, i32) {
    %c0_i32 = arith.constant 0 : i32
    %c0_i32_0 = arith.constant 0 : i32
    return %arg0, %c0_i32 : i32, i32
  }
  func.func @transform_1(%arg0: i32) -> (i32, i32) {
    %c0_i32 = arith.constant 0 : i32
    %c0_i32_0 = arith.constant 0 : i32
    return %arg0, %c0_i32 : i32, i32
  }
  func.func @transform_2(%arg0: i32) -> (i32, i32) {
    %c0_i32 = arith.constant 0 : i32
    %c0_i32_0 = arith.constant 0 : i32
    %c0_i32_1 = arith.constant 0 : i32
    return %c0_i32, %c0_i32_0 : i32, i32
  }
  func.func @transform_3(%arg0: i32) -> (i32, i32) {
    %c0_i32 = arith.constant 0 : i32
    %c0_i32_0 = arith.constant 0 : i32
    %c0_i32_1 = arith.constant 0 : i32
    return %c0_i32, %c0_i32_0 : i32, i32
  }
  func.func @transform_4(%arg0: i32) -> (i32, i32) {
    %c0_i32 = arith.constant 0 : i32
    %c0_i32_0 = arith.constant 0 : i32
    %c0_i32_1 = arith.constant 0 : i32
    return %c0_i32, %c0_i32_0 : i32, i32
  }
  func.func @transform_5(%arg0: i32) -> (i32, i32) {
    %c0_i32 = arith.constant 0 : i32
    %c0_i32_0 = arith.constant 0 : i32
    %c0_i32_1 = arith.constant 0 : i32
    return %c0_i32, %c0_i32_0 : i32, i32
  }
  func.func @transform_6(%arg0: i32) -> (i32, i32) {
    %c0_i32 = arith.constant 0 : i32
    %c0_i32_0 = arith.constant 0 : i32
    return %arg0, %c0_i32 : i32, i32
  }
}

</mosaic_0001>

<bundles_post_ra>
// kernel: tpu_custom_call.1
= control target key start
LH: loop header
LB: loop body
LE: loop exit
PB: predicated region body
PF: predicated region fallthrough
CT: control target
= control target key end

     0   :  { %11 = vsyncpa [#allocation3], 0  ;;  %s696_s0 = inlined_call_operand.hbm [shape: f32[8,128], index: 0, kind: input, shape index: {}]   ;;  %s697_s1 = inlined_call_operand.hbm [shape: f32[8,128], index: 1, kind: input, shape index: {}]   ;;  %s698_s2 = inlined_call_operand.hbm [shape: f32[128,128], index: 2, kind: input, shape index: {}]   ;;  %s699_s3 = inlined_call_operand.vmem [shape: f32[1,128], index: 3, kind: input, shape index: {}]   ;;  %s700_s4 = inlined_call_operand.hbm [shape: f32[128,128], index: 4, kind: input, shape index: {}]   ;;  %s701_s5 = inlined_call_operand.vmem [shape: f32[1,128], index: 5, kind: input, shape index: {}]   ;;  %s702_s6 = inlined_call_operand.hbm [shape: f32[8,128], index: 6, kind: output, shape index: {}]  }
   0x1   :  { %12 = vsyncpa [#allocation6], 0 }
   0x2   :  { %13 = vsyncpa [#allocation9], 0 }
   0x3   :  { %14 = vsyncpa [#allocation4], 0  ;;  %s569_s21 = smov [#allocation5]   ;;  %s570_s23 = smov [#allocation2]  }
   0x4   :  { %s31_s22 = sshll.u32 %s569_s21, 4  ;;  %s21_s24 = sshll.u32 %s570_s23, 4  ;;  %s32_s22 = int_to_ptr.vmem [resolvable:$true] %s31_s22  ;;  %s22_s24 = int_to_ptr.vmem [resolvable:$true] %s21_s24 }
   0x5   :  { %s451_s27 = scalar_lea.hbm %s697_s1, 128 }
   0x6   :  { %p452_p0 = scmp.ne.s32.totalorder %s697_s1, %s451_s27  ;;  %p455_p1 = scmp.lt.u32.totalorder %s451_s27, %s697_s1 }
   0x8   :  { %p457_p2 = pnand %p455_p1, %p452_p0 }
   0xa   :  { %460 = shalt.err (!%p457_p2)
}
   0xb   :  { %s461_s8 = scalar_lea.vmem %s32_s22, 128  ;;  %p466_p4 = scmp.lt.s32.totalorder %s32_s22, %s32_s22 }
   0xc   :  { %p462_p3 = scmp.ne.s32.totalorder %s32_s22, %s461_s8  ;;  %p467_p5 = scmp.lt.s32.totalorder %s461_s8, %s461_s8 }
   0xe   :  { %p468_p6 = por %p467_p5, %p466_p4 }
  0x10   :  { %p469_p7 = pnand %p468_p6, %p462_p3 }
  0x12   :  { %472 = shalt.err (!%p469_p7)
}
  0x13   :  { %34 = dma.hbm_to_vmem [thread:$0]  %s697_s1, 128, %s32_s22, [#allocation6]  }
  0x14   :  { %s473_s13 = scalar_lea.hbm %s696_s0, 128 }
  0x15   :  { %p474_p8 = scmp.ne.s32.totalorder %s696_s0, %s473_s13  ;;  %p477_p9 = scmp.lt.u32.totalorder %s473_s13, %s696_s0 }
  0x17   :  { %p479_p10 = pnand %p477_p9, %p474_p8 }
  0x19   :  { %482 = shalt.err (!%p479_p10)
}
  0x1a   :  { %s483_s18 = scalar_lea.vmem %s22_s24, 128  ;;  %p488_p12 = scmp.lt.s32.totalorder %s22_s24, %s22_s24 }
  0x1b   :  { %p484_p11 = scmp.ne.s32.totalorder %s22_s24, %s483_s18  ;;  %p489_p13 = scmp.lt.s32.totalorder %s483_s18, %s483_s18 }
  0x1d   :  { %p490_p0 = por %p489_p13, %p488_p12 }
  0x1f   :  { %p491_p1 = pnand %p490_p0, %p484_p11 }
  0x21   :  { %494 = shalt.err (!%p491_p1)
}
  0x22   :  { %24 = dma.hbm_to_vmem [thread:$0]  %s696_s0, 128, %s22_s24, [#allocation3]  }
  0x23   :  { %s571_s20 = smov [#allocation7]   ;;  %s495_s25 = scalar_lea.hbm %s698_s2, 2048 }
  0x24   :  { %s40_s21 = sshll.u32 %s571_s20, 4  ;;  %p496_p2 = scmp.ne.s32.totalorder %s698_s2, %s495_s25  ;;  %s41_s21 = int_to_ptr.vmem [resolvable:$true] %s40_s21 }
  0x25   :  { %p499_p3 = scmp.lt.u32.totalorder %s495_s25, %s698_s2 }
  0x27   :  { %p501_p4 = pnand %p499_p3, %p496_p2 }
  0x29   :  { %504 = shalt.err (!%p501_p4)
}
  0x2a   :  { %s505_s30 = scalar_lea.vmem %s41_s21, 2048  ;;  %p510_p6 = scmp.lt.s32.totalorder %s41_s21, %s41_s21 }
  0x2b   :  { %p506_p5 = scmp.ne.s32.totalorder %s41_s21, %s505_s30  ;;  %p511_p7 = scmp.lt.s32.totalorder %s505_s30, %s505_s30 }
  0x2d   :  { %p512_p8 = por %p511_p7, %p510_p6 }
  0x2f   :  { %p513_p9 = pnand %p512_p8, %p506_p5 }
  0x31   :  { %516 = shalt.err (!%p513_p9)
}
  0x32   :  { %s572_s0 = smov 128   ;;  %s573_s24 = smov 8  }
  0x33   :  { %46 = dma.hbm_to_vmem [thread:$0]  %s698_s2, 2048, %s41_s21, [#allocation6], %s572_s0, %s572_s0, %s573_s24  }
  0x34   :  { %s574_s9 = smov [#allocation8]   ;;  %s517_s13 = scalar_lea.hbm %s700_s4, 2048 }
  0x35   :  { %s54_s10 = sshll.u32 %s574_s9, 4  ;;  %p518_p10 = scmp.ne.s32.totalorder %s700_s4, %s517_s13  ;;  %s55_s10 = int_to_ptr.vmem [resolvable:$true] %s54_s10 }
  0x36   :  { %p521_p11 = scmp.lt.u32.totalorder %s517_s13, %s700_s4 }
  0x38   :  { %p523_p12 = pnand %p521_p11, %p518_p10 }
  0x3a   :  { %526 = shalt.err (!%p523_p12)
}
  0x3b   :  { %s527_s18 = scalar_lea.vmem %s55_s10, 2048  ;;  %p532_p0 = scmp.lt.s32.totalorder %s55_s10, %s55_s10 }
  0x3c   :  { %p528_p13 = scmp.ne.s32.totalorder %s55_s10, %s527_s18  ;;  %p533_p1 = scmp.lt.s32.totalorder %s527_s18, %s527_s18 }
  0x3e   :  { %p534_p2 = por %p533_p1, %p532_p0 }
  0x40   :  { %p535_p3 = pnand %p534_p2, %p528_p13 }
  0x42   :  { %538 = shalt.err (!%p535_p3)
}
  0x43   :  { %60 = dma.hbm_to_vmem [thread:$0]  %s700_s4, 2048, %s55_s10, [#allocation9], %s572_s0, %s572_s0, %s573_s24  }
  0x44   :  { %561 = dma.done.wait [#allocation3], 128  }
  0x45   :  { %562 = vsyncadd [#allocation3], 4294967168 }
  0x46   :  { %563 = dma.done.wait [#allocation6], 2176  }
  0x47   :  { %564 = vsyncadd [#allocation6], 4294965120 }
  0x48   :  { %565 = dma.done.wait [#allocation9], 2048  }
  0x49   :  { %566 = vsyncadd [#allocation9], 4294965248  ;;  %v575_v0 = vmov 0.0|0.0   ;;  %vm576_vm0 = vmmov 0   ;;  %v577_v1 = vmov 0.0   ;;  %v76_v2 = vld [vmem:[#allocation7] sm:$0xff] }
  0x4a   :  { %393 = vmatprep.subr.bf16.mxu0 %v575_v0  ;;  %355 = vmatprep.mubr.msk.f32.mxu0 %vm576_vm0, %v577_v1  ;;  %v77_v3 = vld [vmem:[#allocation7 + $0x8] sm:$0xff]  ;;  %v78_v4 = vld [vmem:[#allocation7 + $0x10] sm:$0xff]  ;;  %v79_v6 = vld [vmem:[#allocation7 + $0x18] sm:$0xff]  ;;  %s578_s22 = smov [#allocation10]  }
  0x4b   :  { %417 = vmatprep.subr.bf16.mxu1 %v575_v0  ;;  %390 = vmatprep.mubr.msk.f32.mxu1 %vm576_vm0, %v577_v1  ;;  %v394_v5 = vpack.c.bf16 %v77_v3, %v76_v2  ;;  %v397_v7 = vpack.c.bf16 %v79_v6, %v78_v4  ;;  %v80_v8 = vld [vmem:[#allocation7 + $0x20] sm:$0xff]  ;;  %v81_v9 = vld [vmem:[#allocation7 + $0x28] sm:$0xff]  ;;  %v177_v12 = vld [vmem:[#allocation8 + $0x10] sm:$0xff]  ;;  %s275_s23 = sshll.u32 %s578_s22, 4  ;;  %s276_s23 = int_to_ptr.vmem [resolvable:$true] %s275_s23 }
  0x4c   :  { %v175_v10 = vld [vmem:[#allocation8] sm:$0xff]  ;;  %v176_v11 = vld [vmem:[#allocation8 + $0x8] sm:$0xff]  ;;  %v178_v13 = vld [vmem:[#allocation8 + $0x18] sm:$0xff]  ;;  %v400_v14 = vpack.c.bf16 %v81_v9, %v80_v8  ;;  %p544_p5 = scmp.lt.s32.totalorder %s276_s23, %s276_s23 }
  0x4d   :  { %395 = vmatpush3.bf16.msra.mxu0 %v394_v5  ;;  %v418_v15 = vpack.c.bf16 %v176_v11, %v175_v10  ;;  %v82_v16 = vld [vmem:[#allocation7 + $0x30] sm:$0xff]  ;;  %v83_v17 = vld [vmem:[#allocation7 + $0x38] sm:$0xff]  ;;  %v421_v18 = vpack.c.bf16 %v178_v13, %v177_v12  ;;  %v179_v19 = vld [vmem:[#allocation8 + $0x20] sm:$0xff] }
  0x4e   :  { %396 = vmatprep.subr.bf16.mxu0 %v575_v0  ;;  %v180_v20 = vld [vmem:[#allocation8 + $0x28] sm:$0xff]  ;;  %v403_v21 = vpack.c.bf16 %v83_v17, %v82_v16  ;;  %v84_v22 = vld [vmem:[#allocation7 + $0x40] sm:$0xff]  ;;  %v181_v25 = vld [vmem:[#allocation8 + $0x30] sm:$0xff] }
  0x4f   :  { %419 = vmatpush3.bf16.msra.mxu1 %v418_v15  ;;  %v85_v23 = vld [vmem:[#allocation7 + $0x48] sm:$0xff]  ;;  %v424_v24 = vpack.c.bf16 %v180_v20, %v179_v19  ;;  %v182_v26 = vld [vmem:[#allocation8 + $0x38] sm:$0xff]  ;;  %v86_v28 = vld [vmem:[#allocation7 + $0x50] sm:$0xff] }
  0x50   :  { %420 = vmatprep.subr.bf16.mxu1 %v575_v0  ;;  %v406_v27 = vpack.c.bf16 %v85_v23, %v84_v22  ;;  %v87_v29 = vld [vmem:[#allocation7 + $0x58] sm:$0xff]  ;;  %v427_v30 = vpack.c.bf16 %v182_v26, %v181_v25  ;;  %v183_v31 = vld [vmem:[#allocation8 + $0x40] sm:$0xff]  ;;  %v184_v32 = vld [vmem:[#allocation8 + $0x48] sm:$0xff] }
  0x51   :  { %398 = vmatpush3.bf16.msra.mxu0 %v397_v7  ;;  %v409_v33 = vpack.c.bf16 %v87_v29, %v86_v28  ;;  %v88_v34 = vld [vmem:[#allocation7 + $0x60] sm:$0xff]  ;;  %v89_v35 = vld [vmem:[#allocation7 + $0x68] sm:$0xff]  ;;  %v430_v36 = vpack.c.bf16 %v184_v32, %v183_v31  ;;  %v185_v37 = vld [vmem:[#allocation8 + $0x50] sm:$0xff] }
  0x52   :  { %399 = vmatprep.subr.bf16.mxu0 %v575_v0  ;;  %v186_v38 = vld [vmem:[#allocation8 + $0x58] sm:$0xff]  ;;  %v412_v39 = vpack.c.bf16 %v89_v35, %v88_v34  ;;  %v90_v40 = vld [vmem:[#allocation7 + $0x70] sm:$0xff]  ;;  %v187_v43 = vld [vmem:[#allocation8 + $0x60] sm:$0xff] }
  0x53   :  { %422 = vmatpush3.bf16.msra.mxu1 %v421_v18  ;;  %v91_v41 = vld [vmem:[#allocation7 + $0x78] sm:$0xff]  ;;  %v433_v42 = vpack.c.bf16 %v186_v38, %v185_v37  ;;  %v188_v44 = vld [vmem:[#allocation8 + $0x68] sm:$0xff]  ;;  %v75_v47 = vld [vmem:[#allocation2] sm:$0xff] }
  0x54   :  { %423 = vmatprep.subr.bf16.mxu1 %v575_v0  ;;  %v415_v45 = vpack.c.bf16 %v91_v41, %v90_v40  ;;  %v436_v46 = vpack.c.bf16 %v188_v44, %v187_v43  ;;  %v189_v48 = vld [vmem:[#allocation8 + $0x70] sm:$0xff]  ;;  %v190_v49 = vld [vmem:[#allocation8 + $0x78] sm:$0xff] }
  0x55   :  { %401 = vmatpush3.bf16.msra.mxu0 %v400_v14  ;;  %v439_v50 = vpack.c.bf16 %v190_v49, %v189_v48  ;;  %v286_v51 = vld [vmem:[%s699_s3] ss:$0 sm:$0xff]  ;;  %v169_v52 = vld [vmem:[#allocation5] sm:$0xff]  ;;  %s539_s3 = scalar_lea.vmem %s276_s23, 128 }
  0x56   :  { %402 = vmatprep.subr.bf16.mxu0 %v575_v0  ;;  %vm170_vm1 = vcmp.ge.f32.partialorder %v169_v52, 0.5  ;;  %v287_v57 = vld [vmem:[%s701_s5] ss:$0 sm:$0xff]  ;;  %p540_p4 = scmp.ne.s32.totalorder %s276_s23, %s539_s3  ;;  %p545_p6 = scmp.lt.s32.totalorder %s539_s3, %s539_s3 }
  0x57   :  { %425 = vmatpush3.bf16.msra.mxu1 %v424_v24 }
  0x58   :  { %426 = vmatprep.subr.bf16.mxu1 %v575_v0  ;;  %p546_p7 = por %p545_p6, %p544_p5 }
  0x59   :  { %404 = vmatpush3.bf16.msra.mxu0 %v403_v21 }
  0x5a   :  { %405 = vmatprep.subr.bf16.mxu0 %v575_v0  ;;  %p547_p8 = pnand %p546_p7, %p540_p4 }
  0x5b   :  { %428 = vmatpush3.bf16.msra.mxu1 %v427_v30 }
  0x5c   :  { %429 = vmatprep.subr.bf16.mxu1 %v575_v0 }
  0x5d   :  { %407 = vmatpush3.bf16.msra.mxu0 %v406_v27 }
  0x5e   :  { %408 = vmatprep.subr.bf16.mxu0 %v575_v0 }
  0x5f   :  { %431 = vmatpush3.bf16.msra.mxu1 %v430_v36 }
  0x60   :  { %432 = vmatprep.subr.bf16.mxu1 %v575_v0 }
  0x61   :  { %410 = vmatpush3.bf16.msra.mxu0 %v409_v33 }
  0x62   :  { %411 = vmatprep.subr.bf16.mxu0 %v575_v0 }
  0x63   :  { %434 = vmatpush3.bf16.msra.mxu1 %v433_v42 }
  0x64   :  { %435 = vmatprep.subr.bf16.mxu1 %v575_v0 }
  0x65   :  { %413 = vmatpush3.bf16.msra.mxu0 %v412_v39 }
  0x66   :  { %414 = vmatprep.subr.bf16.mxu0 %v575_v0 }
  0x67   :  { %437 = vmatpush3.bf16.msra.mxu1 %v436_v46 }
  0x68   :  { %438 = vmatprep.subr.bf16.mxu1 %v575_v0 }
  0x69   :  { %416 = vmatpush3.bf16.msra.mxu0 %v415_v45 }
  0x6b   :  { %440 = vmatpush3.bf16.msra.mxu1 %v439_v50 }
  0x6c   :  { %356 = vmatmul.mubr.f32.vlgmr.msra.gmra.mrb[0].mxu0 %v75_v47 }
 0x13f   :  { %v165_v53 = vpop.f32.mrb[0].mxu0 }
 0x140   :  { %v166_v54 = vadd.f32 %v286_v51, %v165_v53  ;;  %v357_v55 = vpop.f32.mrb[1].mxu0 }
 0x142   :  { %vm171_vm2 = vcmp.gt.f32.partialorder %v166_v54, 0.0  ;;  %v173_v56 = vmul.f32 2.0, %v166_v54 }
 0x143   :  { %vm172_vm3 = vmand %vm170_vm1, %vm171_vm2 }
 0x144   :  { %391 = vmatmul.mubr.msk.f32.vlgmr.msra.gmra.mrb[0].mxu1 %vm172_vm3, %v173_v56 }
 0x217   :  { %v264_v58 = vpop.f32.mrb[0].mxu1 }
 0x218   :  { %v265_v59 = vadd.f32 %v287_v57, %v264_v58  ;;  %v392_v60 = vpop.f32.mrb[1].mxu1 }
 0x21a   :  { %268 = vst [vmem:[#allocation10] sm:$0xff] %v265_v59 }
 0x21b   :  { %550 = shalt.err (!%p547_p8)
}
 0x21c   :  { %s551_s27 = scalar_lea.hbm %s702_s6, 128 }
 0x21d   :  { %p552_p9 = scmp.ne.s32.totalorder %s702_s6, %s551_s27  ;;  %p555_p10 = scmp.lt.u32.totalorder %s551_s27, %s702_s6 }
 0x21f   :  { %p557_p11 = pnand %p555_p10, %p552_p9 }
 0x221   :  { %560 = shalt.err (!%p557_p11)
}
 0x222   :  { %278 = dma.vmem_to_hbm [thread:$0]  %s276_s23, 128, %s702_s6, [#allocation4]  }
 0x223   :  { %567 = dma.done.wait [#allocation4], 128  }
 0x224   :  { %568 = vsyncadd [#allocation4], 4294967168 }
 0x225   :  { %282 = vsyncpa [#allocation3], 1 }
 0x226   :  { %283 = vsyncpa [#allocation6], 1 }
 0x227   :  { %284 = vsyncpa [#allocation9], 1 }
 0x228   :  { %285 = vsyncpa [#allocation4], 1 }

</bundles_post_ra>
